<compile_context>
chip_gen: v7x
topology: tpu7x:2x2x1
jax: 0.10.0
libtpu: 0.0.40
codegen_flags: <defaults>
</compile_context>

<pallas_src>
import jax
import jax.numpy as jnp
from jax.experimental import pallas as pl
from jax.experimental.pallas import tpu as pltpu


def _round_up(a: int, b: int) -> int:
    return (a + b - 1) // b * b


def _cdiv(a: int, b: int) -> int:
    return -(-a // b)


def _make_linear_kernel(has_bias: bool, acc_in_out: bool):
    """Builds the tiled linear kernel.

    Refs (in order): x (tm,tk), w (tk,tn), [bias (1,tn)], out (tm,tn),
    [acc (tm,tn) f32 scratch when out dtype != f32].
    The output block index is independent of the K grid axis, so the output
    block stays resident in VMEM across the whole reduction.
    """

    def kernel(*refs):
        if has_bias:
            x_ref, w_ref, b_ref, *rest = refs
        else:
            x_ref, w_ref, *rest = refs
            b_ref = None
        if acc_in_out:
            (o_ref,) = rest
            acc_ref = o_ref  # accumulate directly into the resident f32 output
        else:
            o_ref, acc_ref = rest

        kk = pl.program_id(2)

        @pl.when(kk == 0)
        def _():
            if has_bias:
                # Fold bias into the accumulator init (no epilogue add).
                acc_ref[...] = jnp.broadcast_to(
                    b_ref[...].astype(acc_ref.dtype), acc_ref.shape
                )
            else:
                acc_ref[...] = jnp.zeros_like(acc_ref)

        acc_ref[...] += jnp.dot(
            x_ref[...], w_ref[...], preferred_element_type=jnp.float32
        )

        if not acc_in_out:
            @pl.when(kk == pl.num_programs(2) - 1)
            def _():
                o_ref[...] = acc_ref[...].astype(o_ref.dtype)

    return kernel


def column_forward(
    x,
    trainable_weight,
    non_trainable_weight,
    bias=None,
    *,
    tm: int = 512,
    tn: int = 1024,
    tk: int = 512,
    compute_dtype=None,
):
    """Pallas implementation of column.forward.

    x:                    (..., K)
    trainable_weight:     (O, k)
    non_trainable_weight: (O, K - k)
    bias:                 (O,) or None
    compute_dtype:        optional operand dtype (e.g. jnp.bfloat16) for the
                          MXU-native fast path; accumulation is always f32.
    returns:              (..., O) in x.dtype
    """
    O = trainable_weight.shape[0]
    K = trainable_weight.shape[1] + non_trainable_weight.shape[1]
    assert x.shape[-1] == K

    lead_shape = x.shape[:-1]
    M = 1
    for d in lead_shape:
        M *= int(d)

    out_dtype = x.dtype
    has_bias = bias is not None
    acc_in_out = jnp.dtype(out_dtype) == jnp.dtype(jnp.float32)

    x2 = x.reshape(M, K)
    tw, ntw = trainable_weight, non_trainable_weight
    if compute_dtype is not None:
        x2 = x2.astype(compute_dtype)
        tw = tw.astype(compute_dtype)
        ntw = ntw.astype(compute_dtype)

    # Reconstruct the weight directly in its transposed (K, O) layout so the
    # kernel runs the standard row-major (tm,tk)@(tk,tn) contraction (no
    # per-tile transpose on the MXU path).
    # TODO(synk): cache W^T across calls (it is static w.r.t. x), or split the
    # K grid axis at `k` to feed the trainable/frozen pieces separately and
    # skip this per-call concatenation entirely.
    w_t = jnp.concatenate([tw.T, ntw.T], axis=0)  # (K, O)

    x_item = jnp.dtype(x2.dtype).itemsize
    w_item = jnp.dtype(w_t.dtype).itemsize
    out_item = jnp.dtype(out_dtype).itemsize
    sub = {4: 8, 2: 16, 1: 32}.get(x_item, 8)  # sublane tile for the M dim

    # Tile clamping: lane dims (K, O) stay multiples of 128, M stays a
    # multiple of the dtype's sublane tile.  Partial blocks are fine (masked).
    tm_e = min(_round_up(tm, sub), _round_up(M, sub))
    tn_e = min(_round_up(tn, 128), _round_up(O, 128))
    tk_e = min(_round_up(tk, 128), _round_up(K, 128))

    def vmem_est(tm_, tn_, tk_):
        est = 2 * (tm_ * tk_ * x_item + tk_ * tn_ * w_item + tm_ * tn_ * out_item)
        if not acc_in_out:
            est += tm_ * tn_ * 4
        if has_bias:
            est += 2 * tn_ * 4
        return est

    # Keep the tile plan within ~28 MiB of VMEM (v7x: 64 MiB per TensorCore).
    budget = 28 << 20
    while vmem_est(tm_e, tn_e, tk_e) > budget:
        cands = []
        if tm_e > sub:
            cands.append(("m", tm_e))
        if tn_e > 128:
            cands.append(("n", tn_e))
        if tk_e > 128:
            cands.append(("k", tk_e))
        if not cands:
            break
        which = max(cands, key=lambda c: c[1])[0]
        if which == "m":
            tm_e = max(sub, _round_up(tm_e // 2, sub))
        elif which == "n":
            tn_e = max(128, _round_up(tn_e // 2, 128))
        else:
            tk_e = max(128, _round_up(tk_e // 2, 128))

    grid_m = _cdiv(M, tm_e)
    grid_n = _cdiv(O, tn_e)
    # v7x has 2 TensorCores: avoid collapsing both parallel axes to extent 1.
    if grid_m == 1 and grid_n == 1:
        if M > sub:
            tm_e = _round_up(_cdiv(M, 2), sub)
            grid_m = _cdiv(M, tm_e)
        elif _round_up(O, 128) >= 256:
            tn_e = _round_up(_cdiv(O, 2), 128)
            grid_n = _cdiv(O, tn_e)

    # Only K needs zero-padding: garbage in M/O-tail partial blocks never
    # reaches valid output, but garbage in the K tail would corrupt every
    # output element.
    K_pad = _round_up(K, tk_e)
    grid_k = K_pad // tk_e
    if K_pad != K:
        x2 = jnp.pad(x2, ((0, 0), (0, K_pad - K)))
        w_t = jnp.pad(w_t, ((0, K_pad - K), (0, 0)))

    grid = (grid_m, grid_n, grid_k)

    cost = pl.CostEstimate(
        flops=2 * M * K_pad * O,
        transcendentals=0,
        bytes_accessed=(
            M * K_pad * x_item * grid_n        # x re-streamed per output-col tile
            + K_pad * O * w_item * grid_m      # W re-streamed per output-row tile
            + M * O * out_item
            + (O * 4 * grid_m * grid_n if has_bias else 0)
        ),
    )

    vmem_limit = int(
        min(max(vmem_est(tm_e, tn_e, tk_e) + (8 << 20), 32 << 20), 48 << 20)
    )

    x_spec = pl.BlockSpec((tm_e, tk_e), lambda i, j, kk: (i, kk))
    w_spec = pl.BlockSpec((tk_e, tn_e), lambda i, j, kk: (kk, j))
    out_spec = pl.BlockSpec((tm_e, tn_e), lambda i, j, kk: (i, j))

    in_specs = [x_spec, w_spec]
    args = [x2, w_t]
    if has_bias:
        b2 = bias.reshape(1, O).astype(jnp.float32)
        in_specs.append(pl.BlockSpec((1, tn_e), lambda i, j, kk: (0, j)))
        args.append(b2)

    scratch_shapes = [] if acc_in_out else [pltpu.VMEM((tm_e, tn_e), jnp.float32)]

    out2d = pl.pallas_call(
        _make_linear_kernel(has_bias, acc_in_out),
        out_shape=jax.ShapeDtypeStruct((M, O), out_dtype),
        grid=grid,
        in_specs=in_specs,
        out_specs=out_spec,
        scratch_shapes=scratch_shapes,
        compiler_params=pltpu.CompilerParams(
            dimension_semantics=("parallel", "parallel", "arbitrary"),
            vmem_limit_bytes=vmem_limit,
        ),
        cost_estimate=cost,
    )(*args)

    return out2d.reshape(*lead_shape, O)


if __name__ == "__main__":
    key = jax.random.PRNGKey(0)

    # --- Test 1: shapes consistent with the module (Linear 32 -> 32), bias. ---
    batch, seq, in_features, out_features = 2, 8, 32, 32
    rank = 4

    kx, kw, kb = jax.random.split(key, 3)
    x = jax.random.normal(kx, (batch, seq, in_features), dtype=jnp.float32)
    F_weight = jax.random.normal(kw, (out_features, in_features), dtype=jnp.float32) * 0.1
    F_bias = jax.random.normal(kb, (out_features,), dtype=jnp.float32) * 0.1

    k = min(rank, in_features)
    trainable_weight = F_weight[:, :k]
    non_trainable_weight = F_weight[:, k:]

    out = column_forward(x, trainable_weight, non_trainable_weight, F_bias)
    out = jax.block_until_ready(out)
    ref = x @ F_weight.T + F_bias
    assert out.shape == (batch, seq, out_features)
    assert jnp.allclose(out, ref, atol=1e-5, rtol=1e-5)

    # --- Test 2: multi-step K reduction + ragged O (masked partial blocks), no bias. ---
    in2, out2 = 256, 96
    kx2, kw2 = jax.random.split(kb, 2)
    x2 = jax.random.normal(kx2, (batch, seq, in2), dtype=jnp.float32)
    W2 = jax.random.normal(kw2, (out2, in2), dtype=jnp.float32) * 0.05
    k2 = min(3, in2)
    o2 = column_forward(x2, W2[:, :k2], W2[:, k2:], None, tm=16, tn=128, tk=128)
    o2 = jax.block_until_ready(o2)
    ref2 = x2 @ W2.T
    assert o2.shape == (batch, seq, out2)
    assert jnp.allclose(o2, ref2, atol=1e-4, rtol=1e-4)

    # --- Test 3: bf16 operand fast path (f32 output, direct accumulation). ---
    o3 = column_forward(
        x, trainable_weight, non_trainable_weight, F_bias, compute_dtype=jnp.bfloat16
    )
    o3 = jax.block_until_ready(o3)
    xb = x.astype(jnp.bfloat16).astype(jnp.float32)
    Wb = F_weight.astype(jnp.bfloat16).astype(jnp.float32)
    ref3 = xb @ Wb.T + F_bias
    assert o3.shape == (batch, seq, out_features)
    assert jnp.allclose(o3, ref3, atol=1e-3, rtol=1e-3)

    # --- Test 4: bf16 activations end-to-end (bf16 output, f32 scratch acc). ---
    o4 = column_forward(
        x.astype(jnp.bfloat16),
        trainable_weight.astype(jnp.bfloat16),
        non_trainable_weight.astype(jnp.bfloat16),
        F_bias,
    )
    o4 = jax.block_until_ready(o4)
    assert o4.dtype == jnp.bfloat16
    assert jnp.allclose(o4.astype(jnp.float32), ref3, atol=2e-2, rtol=2e-2)

    print("KERNEL_OK")
</pallas_src>

<mosaic_0001>
module attributes {stable_mosaic.version = 11 : i64} {
  func.func @kernel(%arg0: i32, %arg1: i32, %arg2: i32, %arg3: memref<8x128xf32, #tpu.memory_space<vmem>>, %arg4: memref<128x128xf32, #tpu.memory_space<vmem>>, %arg5: memref<1x128xf32, #tpu.memory_space<vmem>>, %arg6: memref<8x128xf32, #tpu.memory_space<vmem>>) attributes {dimension_semantics = [#tpu.dimension_semantics<parallel>, #tpu.dimension_semantics<parallel>, #tpu.dimension_semantics<arbitrary>], iteration_bounds = array<i64: 2, 1, 1>, scalar_prefetch = 0 : i64, scratch_operands = 0 : i64, tpu.core_type = #tpu.core_type<tc>, window_params = [{transform_indices = @transform_0, window_bounds = array<i64: 8, 128>}, {transform_indices = @transform_1, window_bounds = array<i64: 128, 128>}, {transform_indices = @transform_2, window_bounds = array<i64: 1, 128>}, {transform_indices = @transform_3, window_bounds = array<i64: 8, 128>}]} {
    %c0_i32 = arith.constant 0 : i32
    %0 = arith.cmpi eq, %arg2, %c0_i32 : i32
    %1 = arith.extui %0 : i1 to i32
    %c0_i32_0 = arith.constant 0 : i32
    %2 = arith.cmpi ne, %1, %c0_i32_0 : i32
    scf.if %2 {
      %c0_8 = arith.constant 0 : index
      %c0_9 = arith.constant 0 : index
      %9 = vector.load %arg5[%c0_8, %c0_9] : memref<1x128xf32, #tpu.memory_space<vmem>>, vector<1x128xf32>
      %10 = vector.shape_cast %9 : vector<1x128xf32> to vector<1x128xf32>
      %11 = vector.broadcast %10 : vector<1x128xf32> to vector<8x128xf32>
      %c0_10 = arith.constant 0 : index
      %c0_11 = arith.constant 0 : index
      %12 = vector.load %arg6[%c0_10, %c0_11] : memref<8x128xf32, #tpu.memory_space<vmem>>, vector<8x128xf32>
      tpu.vector_store %arg6[%c0_10, %c0_11], %11 {strides = array<i32>} : memref<8x128xf32, #tpu.memory_space<vmem>>, vector<8x128xf32>,
    } else {
    }
    %c0 = arith.constant 0 : index
    %c0_1 = arith.constant 0 : index
    %3 = vector.load %arg6[%c0, %c0_1] : memref<8x128xf32, #tpu.memory_space<vmem>>, vector<8x128xf32>
    %c0_2 = arith.constant 0 : index
    %c0_3 = arith.constant 0 : index
    %4 = vector.load %arg3[%c0_2, %c0_3] : memref<8x128xf32, #tpu.memory_space<vmem>>, vector<8x128xf32>
    %c0_4 = arith.constant 0 : index
    %c0_5 = arith.constant 0 : index
    %5 = vector.load %arg4[%c0_4, %c0_5] : memref<128x128xf32, #tpu.memory_space<vmem>>, vector<128x128xf32>
    %cst = arith.constant dense<0.000000e+00> : vector<8x128xf32>
    %6 = tpu.matmul %4, %5, %cst {dimension_numbers = #tpu.dot_dimension_numbers<[1], [0], [0], [1], [0, 0, 1, 1], [], []>} : vector<8x128xf32>, vector<128x128xf32>, vector<8x128xf32> -> vector<8x128xf32>
    %7 = arith.addf %3, %6 : vector<8x128xf32>
    %c0_6 = arith.constant 0 : index
    %c0_7 = arith.constant 0 : index
    %8 = vector.load %arg6[%c0_6, %c0_7] : memref<8x128xf32, #tpu.memory_space<vmem>>, vector<8x128xf32>
    tpu.vector_store %arg6[%c0_6, %c0_7], %7 {strides = array<i32>} : memref<8x128xf32, #tpu.memory_space<vmem>>, vector<8x128xf32>,
    return
  }
  func.func @transform_0(%arg0: i32, %arg1: i32, %arg2: i32) -> (i32, i32) {
    %c0_i32 = arith.constant 0 : i32
    return %arg0, %arg2 : i32, i32
  }
  func.func @transform_1(%arg0: i32, %arg1: i32, %arg2: i32) -> (i32, i32) {
    %c0_i32 = arith.constant 0 : i32
    return %arg2, %arg1 : i32, i32
  }
  func.func @transform_2(%arg0: i32, %arg1: i32, %arg2: i32) -> (i32, i32) {
    %c0_i32 = arith.constant 0 : i32
    %c0_i32_0 = arith.constant 0 : i32
    return %c0_i32, %arg1 : i32, i32
  }
  func.func @transform_3(%arg0: i32, %arg1: i32, %arg2: i32) -> (i32, i32) {
    %c0_i32 = arith.constant 0 : i32
    return %arg0, %arg1 : i32, i32
  }
}

</mosaic_0001>

<bundles_post_ra>
// kernel: tpu_custom_call.1
= control target key start
LH: loop header
LB: loop body
LE: loop exit
PB: predicated region body
PF: predicated region fallthrough
CT: control target
= control target key end

     0   :  { %8 = vsyncpa [#allocation3], 0  ;;  %s881_s0 = inlined_call_operand.vmem [shape: f32[16,128], index: 0, kind: input, shape index: {}]   ;;  %s882_s1 = inlined_call_operand.vmem [shape: f32[128,32], index: 1, kind: input, shape index: {}]   ;;  %s883_s2 = inlined_call_operand.vmem [shape: f32[1,32], index: 2, kind: input, shape index: {}]   ;;  %s884_s3 = inlined_call_operand.hbm [shape: f32[16,32], index: 3, kind: output, shape index: {}]  }
   0x1   :  { %10 = vsyncpa [#allocation3 + $0x1], 0  ;;  %s718_s12 = smov 0   ;;  %s720_s13 = smov 0  }
   0x2   :  { %s722_s14 = smov 0   ;;  %s724_s15 = smov 0  }
   0x3   :  { %s726_s16 = smov 0   ;;  %s728_s17 = smov 0  }
   0x4 LB: > { %s466_s18 = sadd.s32 4294967295, %s692_s17   ;;  %s467_s19 = sadd.s32 4294967294, %s692_s17   ;;  %s692_s17 = sphi %s728_s17, %s16_s17   ;;  %s688_s16 = sphi %s726_s16, %s891_s16   ;;  %s684_s15 = sphi %s724_s15, %s890_s15   ;;  %s680_s14 = sphi %s722_s14, %s889_s14   ;;  %s676_s13 = sphi %s720_s13, %s888_s13   ;;  %s672_s12 = sphi %s718_s12, %s887_s12  }
   0x5   : > { %s35_s20 = sadd.s32 1, %s688_s16  ;;  %s126_s21 = sadd.s32 1, %s680_s14 }
   0x6   : > { %p37_p0 = scmp.ge.s32.totalorder %s35_s20, 2  ;;  %p136_p1 = scmp.ne.s32.totalorder %s680_s14, %s676_s13 }
   0x7   : > { %p137_p2 = scmp.eq.s32.totalorder %s466_s18, 1  ;;  %p142_p3 = scmp.ne.s32.totalorder %s676_s13, %s672_s12 }
   0x8   : > { %s893_s20 = smov (%p37_p0, %s35_s20), 0  ;;  %p143_p5 = scmp.eq.s32.totalorder %s467_s19, 1 }
   0x9   : > { %p758_p4 = por %p137_p2, %p136_p1  ;;  %s121_s23 = ssub.s32 %s688_s16, %s893_s20 }
   0xa   : > { %p472_p6 = scmp.ge.s32.totalorder %s692_s17, 1  ;;  %p124_p7 = scmp.eq.s32.totalorder %s121_s23, 0 }
   0xb   : > { %p765_p8 = por %p143_p5, %p142_p3  ;;  %p189_p9 = scmp.lt.s32.totalorder %s692_s17, 3 }
   0xc   : > { %s771_s25 = scalar_select %p124_p7, %s680_s14, %s126_s21  }
   0xd   : > { %p190_p10 = pnand %p472_p6, %p189_p9 }
   0xe   : > { %v259_v0 = vld [vmem:[%s882_s1] sm:$0xff] (!%p190_p10)  ;;  %v260_v1 = vld [vmem:[%s882_s1 + $0x8] sm:$0xff] (!%p190_p10)  ;;  %v261_v2 = vld [vmem:[%s882_s1 + $0x10] sm:$0xff] (!%p190_p10)  ;;  %v694_v3 = vmov (!%p190_p10), 0.0|0.0   ;;  %vm695_vm0 = vmmov (!%p190_p10), 0   ;;  %v696_v6 = vmov (!%p190_p10), 0.0  }
   0xf   : > { %193 = sbr.rel (%p190_p10) target bundleno = 276 (0x114), region = 32  ;;  %532 = vmatprep.subr.bf16.mxu0 (!%p190_p10), %v694_v3  ;;  %v533_v4 = vpack.c.bf16 (!%p190_p10), %v260_v1, %v259_v0  ;;  %v262_v5 = vld [vmem:[%s882_s1 + $0x18] sm:$0xff] (!%p190_p10)  ;;  %529 = vmatprep.mubr.msk.f32.mxu0 (!%p190_p10), %vm695_vm0, %v696_v6  ;;  %v263_v8 = vld [vmem:[%s882_s1 + $0x20] sm:$0xff] (!%p190_p10)  ;;  %v264_v9 = vld [vmem:[%s882_s1 + $0x28] sm:$0xff] (!%p190_p10)  ;;  %p226_p11 = scmp.lt.s32.totalorder (!%p190_p10), %s684_s15, 1 }
  0x10   : > { %v536_v7 = vpack.c.bf16 (!%p190_p10), %v262_v5, %v261_v2  ;;  %v539_v10 = vpack.c.bf16 (!%p190_p10), %v264_v9, %v263_v8  ;;  %v265_v11 = vld [vmem:[%s882_s1 + $0x30] sm:$0xff] (!%p190_p10)  ;;  %v266_v12 = vld [vmem:[%s882_s1 + $0x38] sm:$0xff] (!%p190_p10)  ;;  %v267_v14 = vld [vmem:[%s882_s1 + $0x40] sm:$0xff] (!%p190_p10)  ;;  %s223_s29 = sand.u32 (!%p190_p10), 1, %s676_s13   ;;  %s477_s6 = sshll.u32 (!%p190_p10), %s684_s15, 7 }
  0x11   : > { %534 = vmatpush3.bf16.msra.mxu0 (!%p190_p10), %v533_v4  ;;  %v542_v13 = vpack.c.bf16 (!%p190_p10), %v266_v12, %v265_v11  ;;  %v268_v15 = vld [vmem:[%s882_s1 + $0x48] sm:$0xff] (!%p190_p10)  ;;  %v269_v17 = vld [vmem:[%s882_s1 + $0x50] sm:$0xff] (!%p190_p10)  ;;  %v270_v18 = vld [vmem:[%s882_s1 + $0x58] sm:$0xff] (!%p190_p10)  ;;  %s473_s30 = sshll.u32 (!%p190_p10), %s223_s29, 3  ;;  %s834_s11 = scalar_lea.hbm (!%p190_p10), %s884_s3, %s477_s6 }
  0x12   : > { %535 = vmatprep.subr.bf16.mxu0 (!%p190_p10), %v694_v3  ;;  %v545_v16 = vpack.c.bf16 (!%p190_p10), %v268_v15, %v267_v14  ;;  %v548_v19 = vpack.c.bf16 (!%p190_p10), %v270_v18, %v269_v17  ;;  %v271_v20 = vld [vmem:[%s882_s1 + $0x60] sm:$0xff] (!%p190_p10)  ;;  %v272_v21 = vld [vmem:[%s882_s1 + $0x68] sm:$0xff] (!%p190_p10)  ;;  %v273_v23 = vld [vmem:[%s882_s1 + $0x70] sm:$0xff] (!%p190_p10)  ;;  %s225_s7 = scalar_lea.vmem (!%p190_p10), [#allocation2], %s473_s30  ;;  %s348_s18 = scalar_lea.sflag (!%p190_p10), [#allocation3], %s223_s29 }
  0x13   : > { %v551_v22 = vpack.c.bf16 (!%p190_p10), %v272_v21, %v271_v20  ;;  %v274_v24 = vld [vmem:[%s882_s1 + $0x78] sm:$0xff] (!%p190_p10)  ;;  %v475_v27 = vld [vmem:[%s883_s2] ss:$0 sm:$0xff] (!%p190_p10)  ;;  %s362_s8 = sshll.u32 (!%p190_p10), %s225_s7, 4  ;;  %s836_s8 = int_to_ptr.vmem [resolvable:$true] %s362_s8 }
  0x14   : > { %v554_v25 = vpack.c.bf16 (!%p190_p10), %v274_v24, %v273_v23  ;;  %s614_s19 = scalar_lea.vmem (!%p190_p10), %s836_s8, 128 }
  0x15   : > { %537 = vmatpush3.bf16.msra.mxu0 (!%p190_p10), %v536_v7  ;;  %p615_p12 = scmp.ne.s32.totalorder (!%p190_p10), %s836_s8, %s614_s19 }
  0x16   : > { %538 = vmatprep.subr.bf16.mxu0 %v694_v3  ;;  %s227_s10 = scalar_select %p226_p11, %s684_s15, 1 }
  0x17   : > { %p616_p13 = pnand %p615_p12, %p758_p4  ;;  %s697_s15 = smov [#allocation2]  }
  0x18   : > { %s474_s23 = sshll.u32 %s227_s10, 3  ;;  %s618_s21 = sshll.u32 %s697_s15, 4  ;;  %s619_s21 = int_to_ptr.vmem [resolvable:$false] %s618_s21 }
  0x19   : > { %540 = vmatpush3.bf16.msra.mxu0 %v539_v10  ;;  %s232_s28 = scalar_lea.vmem %s881_s0, %s474_s23  ;;  %p617_p0 = pneg %p616_p13 }
  0x1a   : > { %541 = vmatprep.subr.bf16.mxu0 %v694_v3  ;;  %v258_v26 = vld [vmem:[%s232_s28] sm:$0xff]  ;;  %s620_s23 = scalar_lea.vmem %s619_s21, 256  ;;  %p621_p1 = scmp.lt.s32.totalorder %s836_s8, %s619_s21 }
  0x1b   : > { %p622_p2 = scmp.lt.s32.totalorder %s620_s23, %s614_s19 }
  0x1d   : > { %543 = vmatpush3.bf16.msra.mxu0 %v542_v13  ;;  %p623_p3 = por %p622_p2, %p621_p1 }
  0x1e   : > { %544 = vmatprep.subr.bf16.mxu0 %v694_v3 }
  0x1f   : > { %p624_p5 = pnand %p623_p3, %p617_p0 }
  0x21   : > { %546 = vmatpush3.bf16.msra.mxu0 %v545_v16 }
  0x22   : > { %547 = vmatprep.subr.bf16.mxu0 %v694_v3 }
  0x25   : > { %549 = vmatpush3.bf16.msra.mxu0 %v548_v19 }
  0x26   : > { %550 = vmatprep.subr.bf16.mxu0 %v694_v3 }
  0x29   : > { %552 = vmatpush3.bf16.msra.mxu0 %v551_v22 }
  0x2a   : > { %553 = vmatprep.subr.bf16.mxu0 %v694_v3 }
  0x2d   : > { %555 = vmatpush3.bf16.msra.mxu0 %v554_v25 }
  0x30   : > { %530 = vmatmul.mubr.f32.vlgmr.msra.gmra.mrb[0].mxu0 %v258_v26 }
 0x103   : > { %v341_v28 = vpop.f32.mrb[0].mxu0 }
 0x104   : > { %v345_v29 = vadd.f32 %v475_v27, %v341_v28  ;;  %v531_v30 = vpop.f32.mrb[1].mxu0 }
 0x106   : > { %346 = vst [vmem:[%s225_s7] sm:$0xff] %v345_v29 }
 0x107   : > { %627 = shalt.err (!%p624_p5)
}
 0x108   : > { %s628_s26 = scalar_lea.hbm %s834_s11, 128  ;;  %s632_s29 = scalar_lea.hbm %s884_s3, 256 }
 0x109   : > { %p629_p6 = scmp.ne.s32.totalorder %s834_s11, %s628_s26  ;;  %p633_p10 = scmp.lt.u32.totalorder %s834_s11, %s884_s3 }
 0x10a   : > { %p634_p11 = scmp.lt.u32.totalorder %s632_s29, %s628_s26  ;;  %p636_p13 = scmp.lt.u32.totalorder %s628_s26, %s834_s11 }
 0x10b   : > { %p630_p7 = pnand %p629_p6, %p758_p4 }
 0x10c   : > { %p635_p12 = por %p634_p11, %p633_p10 }
 0x10d   : > { %p631_p9 = pneg %p630_p7 }
 0x10e   : > { %p637_p0 = por %p636_p13, %p635_p12 }
 0x110   : > { %p638_p1 = pnand %p637_p0, %p631_p9 }
 0x112   : > { %641 = shalt.err (!%p638_p1)
}
 0x113   : > { %556 = dma.vmem_to_hbm [thread:$0]  (%p758_p4), %s836_s8, 128, %s834_s11, %s348_s18  }
 0x114 PF: > { %p562_p2 = scmp.ge.s32.totalorder %s692_s17, 2  ;;  %s374_s5 = sand.u32 1, %s672_s12  }
 0x115   : > { %s375_s6 = scalar_lea.sflag [#allocation3], %s374_s5 }
 0x116   : > { %p559_p3 = pnand %p562_p2, %p765_p8 }
 0x118   : > { %667 = dma.done.wait (!%p559_p3), %s375_s6, 128  }
 0x119   : > { %669 = vsyncadd (!%p559_p3), %s375_s6, 4294967168  ;;  %s16_s17 = sadd.s32 1, %s692_s17   ;;  %s887_s12 = smov %s676_s13 }
 0x11a   : > { %p13_p5 = scmp.ge.s32.totalorder %s16_s17, 4   ;;  %s888_s13 = smov %s680_s14 }
 0x11b   : > { %s889_s14 = smov %s771_s25  ;;  %s890_s15 = smov %s688_s16 }
 0x11c   : > { %s891_s16 = smov %s893_s20  ;;  %15 = sbr.rel (!%p13_p5) target bundleno = 4 (0x4), region = 77 }
 0x123   :  { %380 = vsyncpa [#allocation3], 1 }
 0x124   :  { %382 = vsyncpa [#allocation3 + $0x1], 1 }

</bundles_post_ra>
